<compile_context>
chip_gen: v5e
topology: v5e:2x2
jax: 0.10.0
libtpu: 0.0.40
codegen_flags: <defaults>
</compile_context>

<pallas_src>
import functools

import jax
import jax.numpy as jnp
from jax.experimental import pallas as pl
from jax.experimental.pallas import tpu as pltpu


def _round_up(x, m):
    return ((x + m - 1) // m) * m


def bert_mlp_kernel(x_ref, w1_ref, b1_ref, w2_ref, b2_ref, o_ref):
    # x_ref:  (tm, H)    block of flattened tokens (f32 or bf16)
    # w1_ref: (H, H)     dense_layer weight (in x out), resident
    # b1_ref: (1, H)     dense_layer bias (f32)
    # w2_ref: (H, Lp)    dense_to_labels_layer weight, L padded to Lp (>=128)
    # b2_ref: (1, Lp)    dense_to_labels_layer bias (f32, zero-padded)
    # o_ref:  (tm, Lp)   output logits block (lane-dense, unmasked stores)
    x = x_ref[...]
    # First Linear: MXU matmul with f32 accumulation, bias-add + tanh in f32.
    h = jnp.dot(x, w1_ref[...], preferred_element_type=jnp.float32)
    h = jnp.tanh(h + b1_ref[...])                       # EUP tanh, f32 VPU add
    # Second Linear: cast activations to the weight dtype (bf16 on v6e/v7x
    # path, no-op in f32 mode); accumulate in f32, bias-add in f32.
    y = jnp.dot(h.astype(w2_ref.dtype), w2_ref[...],
                preferred_element_type=jnp.float32)
    o_ref[...] = (y + b2_ref[...]).astype(o_ref.dtype)


@functools.partial(jax.jit, static_argnames=("tm", "use_bf16_matmul"))
def bert_mlp(x, w1, b1, w2, b2, *, tm=256, use_bf16_matmul=False):
    """x: (batch, seq, hidden). Returns (batch, seq, num_labels).

    tm: requested row tile (rounded/split internally to keep the MXU fed and
        the grid >= 2 steps for the v7x dual-TensorCore parallel split).
    use_bf16_matmul: cast x and both weights to bf16 for the MXU (v6e/v7x);
        bias-add/tanh and accumulation stay f32.
    """
    B, S, H = x.shape
    L = w2.shape[1]
    M = B * S
    Lp = max(_round_up(L, 128), 128)          # lane-dense output width
    out_dtype = x.dtype

    x2 = x.reshape(M, H)
    if use_bf16_matmul:
        x2 = x2.astype(jnp.bfloat16)
        w1m = w1.astype(jnp.bfloat16)
        w2m = w2.astype(jnp.bfloat16)
    else:
        w1m, w2m = w1, w2

    # Zero-pad the labels dimension so the padded columns are inert.
    if Lp != L:
        w2m = jnp.pad(w2m, ((0, 0), (0, Lp - L)))
        b2p = jnp.pad(b2, ((0, Lp - L),))
    else:
        b2p = b2
    b1r = b1.astype(jnp.float32).reshape(1, H)
    b2r = b2p.astype(jnp.float32).reshape(1, Lp)

    # Row-tile choice: big (MXU-sized) but multiple of 8 sublanes, capped so
    # the grid keeps >= 2 steps when M allows (v7x megacore split).
    tm_eff = max(8, min(tm, _round_up(M, 8)))
    if M > 8 and pl.cdiv(M, tm_eff) < 2:
        tm_eff = _round_up(pl.cdiv(M, 2), 8)
    grid = (pl.cdiv(M, tm_eff),)

    x_bytes = jnp.dtype(x2.dtype).itemsize
    w_bytes = jnp.dtype(w1m.dtype).itemsize
    o_bytes = jnp.dtype(out_dtype).itemsize

    # VMEM budget: double-buffered x/out tiles + resident (double-buffered)
    # weights + biases. Only raise the scoped limit when actually needed;
    # capped at 64 MiB so the request never exceeds v7x physical VMEM.
    vmem_needed = (2 * tm_eff * H * x_bytes
                   + 2 * (H * H + H * Lp) * w_bytes
                   + 2 * (H + Lp) * 4
                   + 2 * tm_eff * Lp * o_bytes)
    vmem_limit = int(min(max(vmem_needed + vmem_needed // 2, 32 * 2**20),
                         64 * 2**20))

    cost = pl.CostEstimate(
        flops=2 * M * H * (H + Lp),
        transcendentals=M * H,
        bytes_accessed=(M * H * x_bytes
                        + (H * H + H * Lp) * w_bytes
                        + (H + Lp) * 4
                        + M * Lp * o_bytes),
    )

    out = pl.pallas_call(
        bert_mlp_kernel,
        out_shape=jax.ShapeDtypeStruct((M, Lp), out_dtype),
        grid_spec=pltpu.PrefetchScalarGridSpec(
            num_scalar_prefetch=0,
            grid=grid,
            in_specs=[
                pl.BlockSpec((tm_eff, H), lambda i: (i, 0)),  # x rows tile
                pl.BlockSpec((H, H), lambda i: (0, 0)),       # W1 (resident)
                pl.BlockSpec((1, H), lambda i: (0, 0)),       # b1
                pl.BlockSpec((H, Lp), lambda i: (0, 0)),      # W2 (resident)
                pl.BlockSpec((1, Lp), lambda i: (0, 0)),      # b2
            ],
            out_specs=pl.BlockSpec((tm_eff, Lp), lambda i: (i, 0)),
        ),
        compiler_params=pltpu.CompilerParams(
            dimension_semantics=("parallel",),
            vmem_limit_bytes=vmem_limit),
        cost_estimate=cost,
    )(x2, w1m, b1r, w2m, b2r)

    # Slice padded label columns back off and restore (B, S, L).
    return out[:, :L].reshape(B, S, L)


def init_params(key, hidden_size, num_labels, dtype=jnp.float32):
    """Deterministic init mimicking torch.nn.Linear (uniform +-1/sqrt(fan_in)).

    Weights are stored as (in_features, out_features), i.e. transposed
    relative to PyTorch's (out, in) so the kernel does x @ W directly.
    """
    k1, k2, k3, k4 = jax.random.split(key, 4)
    bound1 = 1.0 / (hidden_size ** 0.5)
    w1 = jax.random.uniform(k1, (hidden_size, hidden_size), dtype,
                            minval=-bound1, maxval=bound1)
    b1 = jax.random.uniform(k2, (hidden_size,), dtype,
                            minval=-bound1, maxval=bound1)
    w2 = jax.random.uniform(k3, (hidden_size, num_labels), dtype,
                            minval=-bound1, maxval=bound1)
    b2 = jax.random.uniform(k4, (num_labels,), dtype,
                            minval=-bound1, maxval=bound1)
    return w1, b1, w2, b2


if __name__ == "__main__":
    batch, seq, hidden, num_labels = 2, 8, 32, 4

    key = jax.random.PRNGKey(0)
    kx, kp = jax.random.split(key)
    x = jax.random.normal(kx, (batch, seq, hidden), jnp.float32)
    w1, b1, w2, b2 = init_params(kp, hidden, num_labels)

    ref = jnp.tanh(x @ w1 + b1) @ w2 + b2

    # f32 matmul path (exact semantics of the PyTorch forward).
    out = bert_mlp(x, w1, b1, w2, b2)
    jax.block_until_ready(out)
    assert out.shape == (batch, seq, num_labels)
    assert jnp.allclose(out, ref, atol=1e-5, rtol=1e-5)

    # bf16 MXU path (v6e/v7x perf mode) — looser tolerance vs f32 reference.
    out_bf16 = bert_mlp(x, w1, b1, w2, b2, use_bf16_matmul=True)
    jax.block_until_ready(out_bf16)
    assert jnp.allclose(out_bf16, ref, atol=5e-2, rtol=5e-2)

    # Ragged shape: exercises remainder row blocks (M % tm != 0) + masked
    # writeback of the padded last block.
    x3 = jax.random.normal(kx, (3, 7, hidden), jnp.float32)
    out3 = bert_mlp(x3, w1, b1, w2, b2)
    jax.block_until_ready(out3)
    ref3 = jnp.tanh(x3 @ w1 + b1) @ w2 + b2
    assert out3.shape == (3, 7, num_labels)
    assert jnp.allclose(out3, ref3, atol=1e-5, rtol=1e-5)

    print("KERNEL_OK")
</pallas_src>

<mosaic_0001>
module attributes {stable_mosaic.version = 11 : i64} {
  func.func @bert_mlp_kernel(%arg0: i32, %arg1: memref<8x32xf32, #tpu.memory_space<vmem>>, %arg2: memref<32x32xf32, #tpu.memory_space<vmem>>, %arg3: memref<1x32xf32, #tpu.memory_space<vmem>>, %arg4: memref<32x128xf32, #tpu.memory_space<vmem>>, %arg5: memref<1x128xf32, #tpu.memory_space<vmem>>, %arg6: memref<8x128xf32, #tpu.memory_space<vmem>>) attributes {dimension_semantics = [#tpu.dimension_semantics<parallel>], iteration_bounds = array<i64: 2>, scalar_prefetch = 0 : i64, scratch_operands = 0 : i64, tpu.core_type = #tpu.core_type<tc>, window_params = [{transform_indices = @transform_0, window_bounds = array<i64: 8, 32>}, {pipeline_mode = #tpu.pipeline_mode<synchronous>, transform_indices = @transform_1, window_bounds = array<i64: 32, 32>}, {pipeline_mode = #tpu.pipeline_mode<synchronous>, transform_indices = @transform_2, window_bounds = array<i64: 1, 32>}, {pipeline_mode = #tpu.pipeline_mode<synchronous>, transform_indices = @transform_3, window_bounds = array<i64: 32, 128>}, {pipeline_mode = #tpu.pipeline_mode<synchronous>, transform_indices = @transform_4, window_bounds = array<i64: 1, 128>}, {transform_indices = @transform_5, window_bounds = array<i64: 8, 128>}]} {
    %c0 = arith.constant 0 : index
    %c0_0 = arith.constant 0 : index
    %0 = vector.load %arg1[%c0, %c0_0] : memref<8x32xf32, #tpu.memory_space<vmem>>, vector<8x32xf32>
    %c0_1 = arith.constant 0 : index
    %c0_2 = arith.constant 0 : index
    %1 = vector.load %arg2[%c0_1, %c0_2] : memref<32x32xf32, #tpu.memory_space<vmem>>, vector<32x32xf32>
    %cst = arith.constant dense<0.000000e+00> : vector<8x32xf32>
    %2 = tpu.matmul %0, %1, %cst {dimension_numbers = #tpu.dot_dimension_numbers<[1], [0], [0], [1], [0, 0, 1, 1], [], []>} : vector<8x32xf32>, vector<32x32xf32>, vector<8x32xf32> -> vector<8x32xf32>
    %c0_3 = arith.constant 0 : index
    %c0_4 = arith.constant 0 : index
    %3 = vector.load %arg3[%c0_3, %c0_4] : memref<1x32xf32, #tpu.memory_space<vmem>>, vector<1x32xf32>
    %4 = vector.broadcast %3 : vector<1x32xf32> to vector<8x32xf32>
    %5 = arith.addf %2, %4 : vector<8x32xf32>
    %6 = math.tanh %5 : vector<8x32xf32>
    %c0_5 = arith.constant 0 : index
    %c0_6 = arith.constant 0 : index
    %7 = vector.load %arg4[%c0_5, %c0_6] : memref<32x128xf32, #tpu.memory_space<vmem>>, vector<32x128xf32>
    %cst_7 = arith.constant dense<0.000000e+00> : vector<8x128xf32>
    %8 = tpu.matmul %6, %7, %cst_7 {dimension_numbers = #tpu.dot_dimension_numbers<[1], [0], [0], [1], [0, 0, 1, 1], [], []>} : vector<8x32xf32>, vector<32x128xf32>, vector<8x128xf32> -> vector<8x128xf32>
    %c0_8 = arith.constant 0 : index
    %c0_9 = arith.constant 0 : index
    %9 = vector.load %arg5[%c0_8, %c0_9] : memref<1x128xf32, #tpu.memory_space<vmem>>, vector<1x128xf32>
    %10 = vector.broadcast %9 : vector<1x128xf32> to vector<8x128xf32>
    %11 = arith.addf %8, %10 : vector<8x128xf32>
    %c0_10 = arith.constant 0 : index
    %c0_11 = arith.constant 0 : index
    %12 = vector.load %arg6[%c0_10, %c0_11] : memref<8x128xf32, #tpu.memory_space<vmem>>, vector<8x128xf32>
    tpu.vector_store %arg6[%c0_10, %c0_11], %11 {strides = array<i32>} : memref<8x128xf32, #tpu.memory_space<vmem>>, vector<8x128xf32>,
    return
  }
  func.func @transform_0(%arg0: i32) -> (i32, i32) {
    %c0_i32 = arith.constant 0 : i32
    %c0_i32_0 = arith.constant 0 : i32
    return %arg0, %c0_i32 : i32, i32
  }
  func.func @transform_1(%arg0: i32) -> (i32, i32) {
    %c0_i32 = arith.constant 0 : i32
    %c0_i32_0 = arith.constant 0 : i32
    %c0_i32_1 = arith.constant 0 : i32
    return %c0_i32, %c0_i32_0 : i32, i32
  }
  func.func @transform_2(%arg0: i32) -> (i32, i32) {
    %c0_i32 = arith.constant 0 : i32
    %c0_i32_0 = arith.constant 0 : i32
    %c0_i32_1 = arith.constant 0 : i32
    return %c0_i32, %c0_i32_0 : i32, i32
  }
  func.func @transform_3(%arg0: i32) -> (i32, i32) {
    %c0_i32 = arith.constant 0 : i32
    %c0_i32_0 = arith.constant 0 : i32
    %c0_i32_1 = arith.constant 0 : i32
    return %c0_i32, %c0_i32_0 : i32, i32
  }
  func.func @transform_4(%arg0: i32) -> (i32, i32) {
    %c0_i32 = arith.constant 0 : i32
    %c0_i32_0 = arith.constant 0 : i32
    %c0_i32_1 = arith.constant 0 : i32
    return %c0_i32, %c0_i32_0 : i32, i32
  }
  func.func @transform_5(%arg0: i32) -> (i32, i32) {
    %c0_i32 = arith.constant 0 : i32
    %c0_i32_0 = arith.constant 0 : i32
    return %arg0, %c0_i32 : i32, i32
  }
}

</mosaic_0001>

<bundles_post_ra>
// kernel: bert_mlp.1
= control target key start
LH: loop header
LB: loop body
LE: loop exit
PB: predicated region body
PF: predicated region fallthrough
CT: control target
= control target key end

     0   :  { %s400_s18 = smov 0   ;;  %s449_s0 = inlined_call_operand.vmem [shape: f32[16,32], index: 0, kind: input, shape index: {}]   ;;  %s450_s1 = inlined_call_operand.vmem [shape: f32[32,32], index: 1, kind: input, shape index: {}]   ;;  %s451_s2 = inlined_call_operand.vmem [shape: f32[1,32], index: 2, kind: input, shape index: {}]   ;;  %s452_s3 = inlined_call_operand.vmem [shape: f32[32,128], index: 3, kind: input, shape index: {}]   ;;  %s453_s4 = inlined_call_operand.vmem [shape: f32[1,128], index: 4, kind: input, shape index: {}]   ;;  %s454_s5 = inlined_call_operand.vmem [shape: f32[16,128], index: 5, kind: output, shape index: {}]  }
   0x1 LB: > { %s339_s19 = sadd.s32 4294967295, %s368_s18   ;;  %p343_p0 = scmp.ge.s32.totalorder %s368_s18, 1  ;;  %s368_s18 = sphi %s400_s18, %s15_s18  }
   0x2   : > { %p186_p1 = scmp.lt.s32.totalorder %s368_s18, 3 }
   0x4   : > { %p187_p2 = pnand %p343_p0, %p186_p1 }
   0x5   : > { %p212_p3 = scmp.lt.s32.totalorder (!%p187_p2), %s339_s19, 1 }
   0x6   : > { %190 = sbr.rel (%p187_p2) target bundleno = 283 (0x11b), region = 40 }
   0xb   : > { %v224_v0 = vld [vmem:[%s450_s1 + $0x18] sm:$0xff]  ;;  %v223_v1 = vld [vmem:[%s450_s1 + $0x10] sm:$0xff]  ;;  %v222_v2 = vld [vmem:[%s450_s1 + $0x8] sm:$0xff]  ;;  %s456_s19 = smov (!%p212_p3, %s339_s19), 1  ;;  %vm229_vm0 = vcmask 261120  }
   0xc   : > { %245 = vmatpush.msra.mxu0 %v224_v0  ;;  %v221_v3 = vld [vmem:[%s450_s1] sm:$0xff]  ;;  %s344_s28 = sshll.u32 %s456_s19, 3  ;;  %v257_v5 = vld [vmem:[%s452_s3 + $0x18] sm:$0xff]  ;;  %v256_v6 = vld [vmem:[%s452_s3 + $0x10] sm:$0xff] }
   0xd   : > { %s215_s6 = scalar_lea.vmem %s449_s0, %s344_s28  ;;  %277 = vmatpush.msra.mxu1 %v257_v5  ;;  %v255_v7 = vld [vmem:[%s452_s3 + $0x8] sm:$0xff]  ;;  %v254_v8 = vld [vmem:[%s452_s3] sm:$0xff]  ;;  %s219_s22 = scalar_lea.vmem %s454_s5, %s344_s28 }
   0xe   : > { %246 = vmatpush.msra.mxu0 %v223_v1  ;;  %v220_v4 = vld [vmem:[%s215_s6] sm:$0xff] }
   0xf   : > { %278 = vmatpush.msra.mxu1 %v256_v6  ;;  %v358_v9 = vld [vmem:[%s451_s2] ss:$0 sm:$0xff] }
  0x10   : > { %247 = vmatpush.msra.mxu0 %v222_v2  ;;  %v359_v13 = vld [vmem:[%s453_s4] ss:$0 sm:$0xff] }
  0x11   : > { %279 = vmatpush.msra.mxu1 %v255_v7 }
  0x12   : > { %248 = vmatpush.msra.mxu0 %v221_v3 }
  0x13   : > { %346 = vmatmul.msk.f32.vlgmr.msra.gmra.mxu0 %vm229_vm0, %v220_v4  ;;  %280 = vmatpush.msra.mxu1 %v254_v8 }
  0x90   : > { %v250_v10 = vpop.f32.mrf.mxu0 }
  0x91   : > { %v251_v11 = vadd.f32 %v358_v9, %v250_v10 }
  0x93   : > { %360 = vtanh.f32 %v251_v11 }
  0x99   : > { %v361_v12 = vpop.eup %360 }
  0x9a   : > { %347 = vmatmul.msk.f32.vlgmr.msra.gmra.mxu1 %vm229_vm0, %v361_v12 }
 0x117   : > { %v282_v14 = vpop.f32.mrf.mxu1 }
 0x118   : > { %v283_v15 = vadd.f32 %v359_v13, %v282_v14 }
 0x11a   : > { %285 = vst [vmem:[%s219_s22] sm:$0xff] %v283_v15 }
 0x11b PF: > { %s15_s18 = sadd.s32 1, %s368_s18  }
 0x11c   : > { %p12_p4 = scmp.ge.s32.totalorder %s15_s18, 4  }
 0x11e   :  { %14 = sbr.rel (!%p12_p4) target bundleno = 1 (0x1), region = 70 }

</bundles_post_ra>
